<compile_context>
chip_gen: v7x
topology: tpu7x:2x2x1
jax: 0.10.0
libtpu: 0.0.40
codegen_flags: <defaults>
</compile_context>

<pallas_src>
import jax
import jax.numpy as jnp
from jax.experimental import pallas as pl
from jax.experimental.pallas import tpu as pltpu

N, D = 8, 32          # nodes, feature dim (d == in_dim == out_dim in the module)
BN_EPS = 1e-5         # nn.BatchNorm1d default eps
NORM_EPS = 1e-12      # F.normalize default eps

_VMEM = pl.BlockSpec(memory_space=pltpu.MemorySpace.VMEM)
_SMEM = pl.BlockSpec(memory_space=pltpu.MemorySpace.SMEM)

_F32 = jnp.float32
_BF16 = jnp.bfloat16


# ---------------------------------------------------------------------------
# Fused kernel: entire perturbed BGRL forward in one body.
#   t = adj @ [x1 | x2]    (single MXU op, no in-kernel concat)
#   h1   = t @ blkdiag(W_on@W1)   + [c  | c ]   (fused GCN -> fc1)
#   tgt  = t @ [[0,Wt],[Wt,0]]    + [bt | bt]   ([target_x | target_y])
#   ony  = t @ [[0],[W_on]]       + b_on        (online_y, feeds embed only)
# ---------------------------------------------------------------------------
def _bgrl_fused_kernel(a_pack_ref, x2_ref, adj_ref, w_h1_ref, w_tg_ref, w_ony_ref,
                       w_p_ref, slab_ref, ind_ref, alpha_ref, embed_ref, loss_ref):
    adj = adj_ref[...].astype(_BF16)
    a_pack = a_pack_ref[...].astype(_BF16)

    # (1) aggregate both graph views in one MXU op: t = [adj@x1 | adj@x2]  (N, 2D)
    t = jnp.dot(adj, a_pack, preferred_element_type=_F32)
    t_bf = t.astype(_BF16)

    # (2) three independent dots off t (each RHS <= 128 lanes; no lane slicing needed)
    h1 = jnp.dot(t_bf, w_h1_ref[...], preferred_element_type=_F32) + slab_ref[0:1, :]
    tgt = jnp.dot(t_bf, w_tg_ref[...], preferred_element_type=_F32) + slab_ref[1:2, :]
    ony = jnp.dot(t_bf, w_ony_ref[...], preferred_element_type=_F32) + slab_ref[2:3, 0:D]

    # embed = x2 + online_encoder(x2): off the loss-critical path, store directly.
    embed_ref[...] = x2_ref[...] + ony

    # (3) BatchNorm1d (training-mode batch stats) -- stats via MXU dots, not XLU sums.
    #     ones/N @ h1 yields every row equal to the column mean (no sublane broadcast).
    ones_n = jnp.full((N, N), 1.0 / N, dtype=_BF16)
    h1_bf = h1.astype(_BF16)
    mean = jnp.dot(ones_n, h1_bf, preferred_element_type=_F32)
    ex2 = jnp.dot(ones_n, (h1 * h1).astype(_BF16), preferred_element_type=_F32)
    var = jnp.maximum(ex2 - mean * mean, 0.0)
    hn = (h1 - mean) * jax.lax.rsqrt(var + BN_EPS) * slab_ref[3:4, :] + slab_ref[4:5, :]

    # PReLU (single shared slope, scalar from SMEM).
    alpha = alpha_ref[0, 0]
    hp = jnp.where(hn >= 0.0, hn, alpha * hn)

    # (4) predictor second linear (column-packed blkdiag(W2, W2)).
    p = jnp.dot(hp.astype(_BF16), w_p_ref[...], preferred_element_type=_F32) + slab_ref[5:6, :]

    # (5) loss: p and tgt are lane-aligned ([x-block | y-block] in lanes 0:2D).
    #     Per-(row, block) sums of <p,t>, |p|^2, |t|^2 via one MXU dot with a
    #     (2D, 2) block-indicator matrix (no sub-vreg lane slicing on the tail).
    prods = jnp.concatenate([p * tgt, p * p, tgt * tgt], axis=0)          # (3N, 2D)
    sums = jnp.dot(prods.astype(_BF16), ind_ref[...],
                   preferred_element_type=_F32)                           # (3N, 2)
    pt = sums[0:N]
    pp = sums[N:2 * N]
    tt = sums[2 * N:3 * N]
    inv = (jax.lax.rsqrt(jnp.maximum(pp, NORM_EPS * NORM_EPS))
           * jax.lax.rsqrt(jnp.maximum(tt, NORM_EPS * NORM_EPS)))
    cos = pt * inv                                                        # (N, 2)
    # loss = mean_rows[(2-2cos_x) + (2-2cos_y)] = 4 - (2/N) * sum(cos)
    loss_ref[0, 0] = 4.0 - (2.0 / N) * jnp.sum(cos)


# ---------------------------------------------------------------------------
# perb=None branch: embed = x + (adj @ (x @ W) + b), loss = 0
# ---------------------------------------------------------------------------
def _gcn_embed_kernel(x_ref, adj_ref, w_ref, b_ref, o_ref):
    h = jnp.dot(x_ref[...].astype(_BF16), w_ref[...], preferred_element_type=_F32)
    agg = jnp.dot(adj_ref[...].astype(_BF16), h.astype(_BF16),
                  preferred_element_type=_F32)
    o_ref[...] = x_ref[...] + agg + b_ref[...]


# ---------------------------------------------------------------------------
# Parameter packing -- run ONCE whenever params change (hoisted off the call path).
# ---------------------------------------------------------------------------
def pack_params(params):
    w_on, b_on = params["online_w"], params["online_b"]
    w_t, b_t = params["target_w"], params["target_b"]
    w1, b1, gamma, beta, alpha, w2, b2 = params["pred"]
    z = jnp.zeros((D, D), _F32)
    zd = jnp.zeros((D,), _F32)

    # Fused online-GCN -> fc1: (s@W_on + b_on)@W1 + b1 = s@(W_on@W1) + (b_on@W1 + b1)
    m = jnp.dot(w_on, w1, precision="highest")
    c = jnp.dot(b_on, w1, precision="highest") + b1

    def blkdiag(a, b):
        return jnp.concatenate(
            [jnp.concatenate([a, jnp.zeros_like(b)], axis=1),
             jnp.concatenate([jnp.zeros_like(a), b], axis=1)], axis=0)

    w_h1 = blkdiag(m, m)                                   # (2D,2D): [h1_x | h1_y]
    # target columns: [target_x | target_y] = [s2@Wt | s1@Wt]
    w_tg = jnp.concatenate(
        [jnp.concatenate([z, w_t], axis=1),
         jnp.concatenate([w_t, z], axis=1)], axis=0)       # (2D,2D)
    w_ony = jnp.concatenate([z, w_on], axis=0)             # (2D,D): online_y = s2@W_on
    w_p = blkdiag(w2, w2)                                  # (2D,2D)

    slab = jnp.stack([
        jnp.concatenate([c, c]),                           # row 0: fused h1 bias
        jnp.concatenate([b_t, b_t]),                       # row 1: target bias
        jnp.concatenate([b_on, zd]),                       # row 2: online_y bias (lanes 0:D)
        jnp.concatenate([gamma, gamma]),                   # row 3: BN weight
        jnp.concatenate([beta, beta]),                     # row 4: BN bias
        jnp.concatenate([b2, b2]),                         # row 5: fc2 bias
        jnp.zeros((2 * D,), _F32), jnp.zeros((2 * D,), _F32)], axis=0)   # (8, 2D)

    # (2D, 2) block indicator: rows 0:D -> col 0, rows D:2D -> col 1
    ind = jnp.repeat(jnp.eye(2, dtype=_F32), D, axis=0)

    return {
        "w_h1": w_h1.astype(_BF16),
        "w_tg": w_tg.astype(_BF16),
        "w_ony": w_ony.astype(_BF16),
        "w_p": w_p.astype(_BF16),
        "ind": ind.astype(_BF16),
        "slab": slab,
        "alpha": alpha.reshape(1, 1).astype(_F32),
        "gcn_w": w_on.astype(_BF16),
        "gcn_b": b_on.reshape(1, D),
    }


# ---------------------------------------------------------------------------
# Parameter initialization (mirrors the module's __init__ shapes)
# ---------------------------------------------------------------------------
def init_params(key, d):
    keys = jax.random.split(key, 8)

    def xavier(k, fan_in, fan_out):
        bound = jnp.sqrt(6.0 / (fan_in + fan_out))
        return jax.random.uniform(k, (fan_in, fan_out), _F32, -bound, bound)

    def linear(kw, kb, fan_in, fan_out):
        bound = 1.0 / jnp.sqrt(fan_in)
        w = jax.random.uniform(kw, (fan_in, fan_out), _F32, -bound, bound)
        b = jax.random.uniform(kb, (fan_out,), _F32, -bound, bound)
        return w, b

    online_w = xavier(keys[0], d, d)
    online_b = jnp.zeros((d,), _F32)
    # target_encoder = copy.deepcopy(online_encoder) at init
    target_w, target_b = online_w, online_b

    w1, b1 = linear(keys[1], keys[2], d, d)
    gamma = jnp.ones((d,), _F32)          # BatchNorm1d weight
    beta = jnp.zeros((d,), _F32)          # BatchNorm1d bias
    alpha = jnp.full((1,), 0.25, _F32)    # PReLU default slope
    w2, b2 = linear(keys[3], keys[4], d, d)

    # fc1 / fc2 exist in __init__ but are unused in forward(); omitted.
    return {
        "online_w": online_w, "online_b": online_b,
        "target_w": target_w, "target_b": target_b,
        "pred": (w1, b1, gamma, beta, alpha, w2, b2),
    }


# ---------------------------------------------------------------------------
# BGRL.forward  (packed = pack_params(params), precomputed once)
# ---------------------------------------------------------------------------
def bgrl_forward(packed, x, adj, perb=None):
    if perb is None:
        embed = pl.pallas_call(
            _gcn_embed_kernel,
            out_shape=jax.ShapeDtypeStruct((N, D), _F32),
            in_specs=[_VMEM, _VMEM, _VMEM, _VMEM],
            out_specs=_VMEM,
        )(x, adj, packed["gcn_w"], packed["gcn_b"])
        return embed, jnp.float32(0.0)

    # Per-call input prep stays in the (cheap) XLA wrapper; the kernel sees a
    # pre-packed (N, 2D) LHS so its first op is the adjacency matmul.
    x2 = x + perb
    a_pack = jnp.concatenate([x, x2], axis=1)              # [x1 | x2]  (N, 2D)

    embed, loss = pl.pallas_call(
        _bgrl_fused_kernel,
        out_shape=(jax.ShapeDtypeStruct((N, D), _F32),
                   jax.ShapeDtypeStruct((1, 1), _F32)),
        in_specs=[_VMEM, _VMEM, _VMEM, _VMEM, _VMEM, _VMEM, _VMEM, _VMEM, _VMEM, _SMEM],
        out_specs=(_VMEM, _SMEM),
    )(a_pack, x2, adj, packed["w_h1"], packed["w_tg"], packed["w_ony"],
      packed["w_p"], packed["slab"], packed["ind"], packed["alpha"])
    return embed, loss[0, 0]


# ---------------------------------------------------------------------------
# Pure-JAX reference (mirrors the PyTorch module, f32/highest) for correctness
# ---------------------------------------------------------------------------
def _reference_forward(params, x, adj, perb):
    hdot = lambda a, b: jnp.dot(a, b, precision="highest")

    def gcn(z, w, b):
        return hdot(adj, hdot(z, w)) + b

    def predictor(h):
        w1, b1, gamma, beta, alpha, w2, b2 = params["pred"]
        h = hdot(h, w1) + b1
        m = h.mean(axis=0, keepdims=True)
        v = ((h - m) ** 2).mean(axis=0, keepdims=True)
        h = (h - m) / jnp.sqrt(v + BN_EPS) * gamma + beta
        h = jnp.where(h >= 0.0, h, alpha * h)
        return hdot(h, w2) + b2

    def l2n(v):
        nrm = jnp.sqrt(jnp.sum(v * v, axis=-1, keepdims=True))
        return v / jnp.maximum(nrm, NORM_EPS)

    x1, x2 = x, x + perb
    on = lambda z: gcn(z, params["online_w"], params["online_b"])
    tg = lambda z: gcn(z, params["target_w"], params["target_b"])
    embed = x2 + on(x2)
    ox, oy = predictor(on(x1)), predictor(on(x2))
    tx, ty = tg(x2), tg(x1)
    lf = lambda a, b: 2.0 - 2.0 * jnp.sum(l2n(a) * l2n(b), axis=-1)
    return embed, (lf(ox, tx) + lf(oy, ty)).mean()


if __name__ == "__main__":
    key = jax.random.PRNGKey(0)
    k_x, k_adj, k_perb, k_param, k_tgt = jax.random.split(key, 5)

    x = jax.random.normal(k_x, (N, D), _F32)
    adj_raw = (jax.random.uniform(k_adj, (N, N)) > 0.5).astype(_F32)
    adj_raw = adj_raw + jnp.eye(N, dtype=_F32)
    adj = adj_raw / jnp.sum(adj_raw, axis=-1, keepdims=True)
    perb = 0.01 * jax.random.normal(k_perb, (N, D), _F32)

    params = init_params(k_param, D)
    # Emulate one update_target_network() step so the target branch is exercised
    # with weights that differ from the online encoder (forward semantics unchanged).
    params["target_w"] = (0.99 * params["online_w"]
                          + 0.01 * jax.random.normal(k_tgt, (D, D), _F32))
    params["target_b"] = params["online_b"] + 0.01

    packed = pack_params(params)          # hoisted: computed once, reused every call

    fwd = jax.jit(bgrl_forward)
    embed, loss = fwd(packed, x, adj, perb)
    jax.block_until_ready((embed, loss))

    ref_embed, ref_loss = _reference_forward(params, x, adj, perb)
    assert embed.shape == (N, D) and loss.shape == ()
    # Kernel matmuls use bf16 operands with f32 accumulation (native MXU path), so
    # tolerances are set at bf16-rounding level; structural bugs are O(0.1+) and caught.
    assert bool(jnp.allclose(embed, ref_embed, rtol=2e-2, atol=2e-2)), "embed mismatch"
    assert bool(jnp.allclose(loss, ref_loss, rtol=5e-2, atol=5e-2)), "loss mismatch"

    # perb=None branch
    fwd0 = jax.jit(lambda pk, a, b: bgrl_forward(pk, a, b, None))
    embed0, loss0 = fwd0(packed, x, adj)
    jax.block_until_ready((embed0, loss0))
    ref_embed0 = x + (jnp.dot(adj, jnp.dot(x, params["online_w"], precision="highest"),
                              precision="highest") + params["online_b"])
    assert bool(jnp.allclose(embed0, ref_embed0, rtol=2e-2, atol=2e-2)), "embed0 mismatch"
    assert float(loss0) == 0.0

    print("KERNEL_OK")
</pallas_src>

<mosaic_0001>
module attributes {stable_mosaic.version = 11 : i64} {
  func.func @_bgrl_fused_kernel(%arg0: memref<8x64xf32, #tpu.memory_space<vmem>>, %arg1: memref<8x32xf32, #tpu.memory_space<vmem>>, %arg2: memref<8x8xf32, #tpu.memory_space<vmem>>, %arg3: memref<64x64xbf16, #tpu.memory_space<vmem>>, %arg4: memref<64x64xbf16, #tpu.memory_space<vmem>>, %arg5: memref<64x32xbf16, #tpu.memory_space<vmem>>, %arg6: memref<64x64xbf16, #tpu.memory_space<vmem>>, %arg7: memref<8x64xf32, #tpu.memory_space<vmem>>, %arg8: memref<64x2xbf16, #tpu.memory_space<vmem>>, %arg9: memref<1x1xf32, #tpu.memory_space<smem>>, %arg10: memref<8x32xf32, #tpu.memory_space<vmem>>, %arg11: memref<1x1xf32, #tpu.memory_space<smem>>) attributes {dimension_semantics = [], scalar_prefetch = 0 : i64, scratch_operands = 0 : i64, tpu.core_type = #tpu.core_type<tc>} {
    %c0 = arith.constant 0 : index
    %c0_0 = arith.constant 0 : index
    %0 = vector.load %arg2[%c0, %c0_0] : memref<8x8xf32, #tpu.memory_space<vmem>>, vector<8x8xf32>
    %1 = arith.truncf %0 : vector<8x8xf32> to vector<8x8xbf16>
    %c0_1 = arith.constant 0 : index
    %c0_2 = arith.constant 0 : index
    %2 = vector.load %arg0[%c0_1, %c0_2] : memref<8x64xf32, #tpu.memory_space<vmem>>, vector<8x64xf32>
    %3 = arith.truncf %2 : vector<8x64xf32> to vector<8x64xbf16>
    %cst = arith.constant dense<0.000000e+00> : vector<8x64xf32>
    %4 = tpu.matmul %1, %3, %cst {dimension_numbers = #tpu.dot_dimension_numbers<[1], [0], [0], [1], [0, 0, 1, 1], [], []>} : vector<8x8xbf16>, vector<8x64xbf16>, vector<8x64xf32> -> vector<8x64xf32>
    %5 = arith.truncf %4 : vector<8x64xf32> to vector<8x64xbf16>
    %c0_3 = arith.constant 0 : index
    %c0_4 = arith.constant 0 : index
    %6 = vector.load %arg3[%c0_3, %c0_4] : memref<64x64xbf16, #tpu.memory_space<vmem>>, vector<64x64xbf16>
    %cst_5 = arith.constant dense<0.000000e+00> : vector<8x64xf32>
    %7 = tpu.matmul %5, %6, %cst_5 {dimension_numbers = #tpu.dot_dimension_numbers<[1], [0], [0], [1], [0, 0, 1, 1], [], []>} : vector<8x64xbf16>, vector<64x64xbf16>, vector<8x64xf32> -> vector<8x64xf32>
    %c0_6 = arith.constant 0 : index
    %c0_7 = arith.constant 0 : index
    %8 = vector.load %arg7[%c0_6, %c0_7] : memref<8x64xf32, #tpu.memory_space<vmem>>, vector<1x64xf32>
    %9 = vector.broadcast %8 : vector<1x64xf32> to vector<8x64xf32>
    %10 = arith.addf %7, %9 : vector<8x64xf32>
    %c0_8 = arith.constant 0 : index
    %c0_9 = arith.constant 0 : index
    %11 = vector.load %arg4[%c0_8, %c0_9] : memref<64x64xbf16, #tpu.memory_space<vmem>>, vector<64x64xbf16>
    %cst_10 = arith.constant dense<0.000000e+00> : vector<8x64xf32>
    %12 = tpu.matmul %5, %11, %cst_10 {dimension_numbers = #tpu.dot_dimension_numbers<[1], [0], [0], [1], [0, 0, 1, 1], [], []>} : vector<8x64xbf16>, vector<64x64xbf16>, vector<8x64xf32> -> vector<8x64xf32>
    %c1 = arith.constant 1 : index
    %c0_11 = arith.constant 0 : index
    %13 = vector.load %arg7[%c1, %c0_11] : memref<8x64xf32, #tpu.memory_space<vmem>>, vector<1x64xf32>
    %14 = vector.broadcast %13 : vector<1x64xf32> to vector<8x64xf32>
    %15 = arith.addf %12, %14 : vector<8x64xf32>
    %c0_12 = arith.constant 0 : index
    %c0_13 = arith.constant 0 : index
    %16 = vector.load %arg5[%c0_12, %c0_13] : memref<64x32xbf16, #tpu.memory_space<vmem>>, vector<64x32xbf16>
    %cst_14 = arith.constant dense<0.000000e+00> : vector<8x32xf32>
    %17 = tpu.matmul %5, %16, %cst_14 {dimension_numbers = #tpu.dot_dimension_numbers<[1], [0], [0], [1], [0, 0, 1, 1], [], []>} : vector<8x64xbf16>, vector<64x32xbf16>, vector<8x32xf32> -> vector<8x32xf32>
    %c2 = arith.constant 2 : index
    %c0_15 = arith.constant 0 : index
    %18 = vector.load %arg7[%c2, %c0_15] : memref<8x64xf32, #tpu.memory_space<vmem>>, vector<1x32xf32>
    %19 = vector.broadcast %18 : vector<1x32xf32> to vector<8x32xf32>
    %20 = arith.addf %17, %19 : vector<8x32xf32>
    %c0_16 = arith.constant 0 : index
    %c0_17 = arith.constant 0 : index
    %21 = vector.load %arg1[%c0_16, %c0_17] : memref<8x32xf32, #tpu.memory_space<vmem>>, vector<8x32xf32>
    %22 = arith.addf %21, %20 : vector<8x32xf32>
    %c0_18 = arith.constant 0 : index
    %c0_19 = arith.constant 0 : index
    %23 = vector.load %arg10[%c0_18, %c0_19] : memref<8x32xf32, #tpu.memory_space<vmem>>, vector<8x32xf32>
    tpu.vector_store %arg10[%c0_18, %c0_19], %22 {strides = array<i32>} : memref<8x32xf32, #tpu.memory_space<vmem>>, vector<8x32xf32>,
    %cst_20 = arith.constant 1.250000e-01 : bf16
    %24 = vector.broadcast %cst_20 : bf16 to vector<8x8xbf16>
    %25 = arith.truncf %10 : vector<8x64xf32> to vector<8x64xbf16>
    %cst_21 = arith.constant dense<0.000000e+00> : vector<8x64xf32>
    %26 = tpu.matmul %24, %25, %cst_21 {dimension_numbers = #tpu.dot_dimension_numbers<[1], [0], [0], [1], [0, 0, 1, 1], [], []>} : vector<8x8xbf16>, vector<8x64xbf16>, vector<8x64xf32> -> vector<8x64xf32>
    %27 = arith.mulf %10, %10 : vector<8x64xf32>
    %28 = arith.truncf %27 : vector<8x64xf32> to vector<8x64xbf16>
    %cst_22 = arith.constant dense<0.000000e+00> : vector<8x64xf32>
    %29 = tpu.matmul %24, %28, %cst_22 {dimension_numbers = #tpu.dot_dimension_numbers<[1], [0], [0], [1], [0, 0, 1, 1], [], []>} : vector<8x8xbf16>, vector<8x64xbf16>, vector<8x64xf32> -> vector<8x64xf32>
    %30 = arith.mulf %26, %26 : vector<8x64xf32>
    %31 = arith.subf %29, %30 : vector<8x64xf32>
    %cst_23 = arith.constant 0.000000e+00 : f32
    %32 = vector.broadcast %cst_23 : f32 to vector<8x64xf32>
    %33 = arith.maximumf %31, %32 : vector<8x64xf32>
    %34 = arith.subf %10, %26 : vector<8x64xf32>
    %cst_24 = arith.constant 9.99999974E-6 : f32
    %35 = vector.broadcast %cst_24 : f32 to vector<8x64xf32>
    %36 = arith.addf %33, %35 : vector<8x64xf32>
    %37 = math.rsqrt %36 : vector<8x64xf32>
    %38 = arith.mulf %34, %37 : vector<8x64xf32>
    %c3 = arith.constant 3 : index
    %c0_25 = arith.constant 0 : index
    %39 = vector.load %arg7[%c3, %c0_25] : memref<8x64xf32, #tpu.memory_space<vmem>>, vector<1x64xf32>
    %40 = vector.broadcast %39 : vector<1x64xf32> to vector<8x64xf32>
    %41 = arith.mulf %38, %40 : vector<8x64xf32>
    %c4 = arith.constant 4 : index
    %c0_26 = arith.constant 0 : index
    %42 = vector.load %arg7[%c4, %c0_26] : memref<8x64xf32, #tpu.memory_space<vmem>>, vector<1x64xf32>
    %43 = vector.broadcast %42 : vector<1x64xf32> to vector<8x64xf32>
    %44 = arith.addf %41, %43 : vector<8x64xf32>
    %c0_27 = arith.constant 0 : index
    %c0_28 = arith.constant 0 : index
    %45 = memref.load %arg9[%c0_27, %c0_28] : memref<1x1xf32, #tpu.memory_space<smem>>
    %cst_29 = arith.constant 0.000000e+00 : f32
    %46 = vector.broadcast %cst_29 : f32 to vector<8x64xf32>
    %47 = arith.cmpf oge, %44, %46 : vector<8x64xf32>
    %48 = vector.broadcast %45 : f32 to vector<8x64xf32>
    %49 = arith.mulf %48, %44 : vector<8x64xf32>
    %50 = arith.select %47, %44, %49 : vector<8x64xi1>, vector<8x64xf32>
    %51 = arith.truncf %50 : vector<8x64xf32> to vector<8x64xbf16>
    %c0_30 = arith.constant 0 : index
    %c0_31 = arith.constant 0 : index
    %52 = vector.load %arg6[%c0_30, %c0_31] : memref<64x64xbf16, #tpu.memory_space<vmem>>, vector<64x64xbf16>
    %cst_32 = arith.constant dense<0.000000e+00> : vector<8x64xf32>
    %53 = tpu.matmul %51, %52, %cst_32 {dimension_numbers = #tpu.dot_dimension_numbers<[1], [0], [0], [1], [0, 0, 1, 1], [], []>} : vector<8x64xbf16>, vector<64x64xbf16>, vector<8x64xf32> -> vector<8x64xf32>
    %c5 = arith.constant 5 : index
    %c0_33 = arith.constant 0 : index
    %54 = vector.load %arg7[%c5, %c0_33] : memref<8x64xf32, #tpu.memory_space<vmem>>, vector<1x64xf32>
    %55 = vector.broadcast %54 : vector<1x64xf32> to vector<8x64xf32>
    %56 = arith.addf %53, %55 : vector<8x64xf32>
    %57 = arith.mulf %56, %15 : vector<8x64xf32>
    %58 = arith.mulf %56, %56 : vector<8x64xf32>
    %59 = arith.mulf %15, %15 : vector<8x64xf32>
    %60 = tpu.concatenate %57, %58, %59 in 0 : vector<8x64xf32>, vector<8x64xf32>, vector<8x64xf32> -> vector<24x64xf32>
    %61 = arith.truncf %60 : vector<24x64xf32> to vector<24x64xbf16>
    %c0_34 = arith.constant 0 : index
    %c0_35 = arith.constant 0 : index
    %62 = vector.load %arg8[%c0_34, %c0_35] : memref<64x2xbf16, #tpu.memory_space<vmem>>, vector<64x2xbf16>
    %cst_36 = arith.constant dense<0.000000e+00> : vector<24x2xf32>
    %63 = tpu.matmul %61, %62, %cst_36 {dimension_numbers = #tpu.dot_dimension_numbers<[1], [0], [0], [1], [0, 0, 1, 1], [], []>} : vector<24x64xbf16>, vector<64x2xbf16>, vector<24x2xf32> -> vector<24x2xf32>
    %64 = vector.extract_strided_slice %63 {offsets = [0, 0], sizes = [8, 2], strides = [1, 1]} : vector<24x2xf32> to vector<8x2xf32>
    %65 = vector.extract_strided_slice %63 {offsets = [8, 0], sizes = [8, 2], strides = [1, 1]} : vector<24x2xf32> to vector<8x2xf32>
    %66 = vector.extract_strided_slice %63 {offsets = [16, 0], sizes = [8, 2], strides = [1, 1]} : vector<24x2xf32> to vector<8x2xf32>
    %cst_37 = arith.constant 1.000000e-24 : f32
    %67 = vector.broadcast %cst_37 : f32 to vector<8x2xf32>
    %68 = arith.maximumf %65, %67 : vector<8x2xf32>
    %69 = math.rsqrt %68 : vector<8x2xf32>
    %cst_38 = arith.constant 1.000000e-24 : f32
    %70 = vector.broadcast %cst_38 : f32 to vector<8x2xf32>
    %71 = arith.maximumf %66, %70 : vector<8x2xf32>
    %72 = math.rsqrt %71 : vector<8x2xf32>
    %73 = arith.mulf %69, %72 : vector<8x2xf32>
    %74 = arith.mulf %64, %73 : vector<8x2xf32>
    %75 = vector.shape_cast %74 : vector<8x2xf32> to vector<1x8x2xf32>
    %cst_39 = arith.constant dense<0.000000e+00> : vector<1xf32>
    %76 = vector.multi_reduction <add>, %75, %cst_39 [1, 2] : vector<1x8x2xf32> to vector<1xf32>
    %77 = vector.shape_cast %76 : vector<1xf32> to vector<1x1x1xf32>
    %78 = vector.extract %77[0, 0, 0] : f32 from vector<1x1x1xf32>
    %cst_40 = arith.constant 2.500000e-01 : f32
    %79 = arith.mulf %cst_40, %78 : f32
    %cst_41 = arith.constant 4.000000e+00 : f32
    %80 = arith.subf %cst_41, %79 : f32
    %c0_42 = arith.constant 0 : index
    %c0_43 = arith.constant 0 : index
    %81 = memref.load %arg11[%c0_42, %c0_43] : memref<1x1xf32, #tpu.memory_space<smem>>
    memref.store %80, %arg11[%c0_42, %c0_43] : memref<1x1xf32, #tpu.memory_space<smem>>
    return
  }
}

</mosaic_0001>

<bundles_post_ra>
// kernel: bgrl_forward.1
= control target key start
LH: loop header
LB: loop body
LE: loop exit
PB: predicated region body
PF: predicated region fallthrough
CT: control target
= control target key end

     0   :  { %18 = vsyncpa [#allocation4], 0  ;;  %vm50_vm0 = vcmask 1043456   ;;  %v884_v2 = vmov 0.0   ;;  %vm885_vm1 = vmmov 0   ;;  %vm46_vm2 = vcmask 64512   ;;  %s1118_s0 = inlined_call_operand.vmem [shape: f32[8,64], index: 0, kind: input, shape index: {}]   ;;  %s1119_s1 = inlined_call_operand.vmem [shape: f32[8,32], index: 1, kind: input, shape index: {}]   ;;  %s1120_s2 = inlined_call_operand.vmem [shape: f32[8,8], index: 2, kind: input, shape index: {}]   ;;  %s1121_s3 = inlined_call_operand.vmem [shape: bf16[64,64], index: 3, kind: input, shape index: {}]   ;;  %s1122_s4 = inlined_call_operand.vmem [shape: bf16[64,64], index: 4, kind: input, shape index: {}]   ;;  %s1123_s5 = inlined_call_operand.vmem [shape: bf16[64,32], index: 5, kind: input, shape index: {}]   ;;  %s1124_s6 = inlined_call_operand.vmem [shape: bf16[64,64], index: 6, kind: input, shape index: {}]   ;;  %s1125_s7 = inlined_call_operand.vmem [shape: f32[8,64], index: 7, kind: input, shape index: {}]   ;;  %s1126_s8 = inlined_call_operand.vmem [shape: bf16[64,2], index: 8, kind: input, shape index: {}]   ;;  %s1127_s9 = inlined_call_operand.<no memory space> [shape: f32[1,1], index: 9, kind: input, shape index: {}]   ;;  %s1128_s10 = inlined_call_operand.hbm [shape: f32[8,32], index: 10, kind: output, shape index: {0}]   ;;  %s1129_s11 = inlined_call_operand.hbm [shape: f32[1,1], index: 11, kind: output, shape index: {1}]  }
   0x1   :  { %v44_v0 = vld [vmem:[%s1118_s0] sm:$0xff]  ;;  %737 = vmatprep.subr.bf16.mxu0 %v884_v2  ;;  %739 = vmatprep.mubr.msk.bf16.mxu0 %vm885_vm1, %v884_v2  ;;  %v824_v7 = vld [vmem:[%s1121_s3 + $0x8] sm:$0xff]   ;;  %v826_v10 = vld [vmem:[%s1121_s3 + $0x10] sm:$0xff]  }
   0x2   :  { %v42_v1 = vld [vmem:[%s1120_s2] sm:$0xff]  ;;  %v45_v3 = vpack.c.bf16 %v44_v0, %v44_v0  ;;  %743 = vmatprep.subr.bf16.mxu1 %v884_v2  ;;  %751 = vmatprep.mubr.msk.bf16.mxu1 %vm885_vm1, %v884_v2  ;;  %v825_v9 = vld [vmem:[%s1122_s4 + $0x8] sm:$0xff]   ;;  %v828_v11 = vld [vmem:[%s1121_s3 + $0x18] sm:$0xff]  }
   0x3   :  { %v822_v4 = vld [vmem:[%s1121_s3] sm:$0xff]   ;;  %v43_v6 = vpack.c.bf16 %v42_v1, %v42_v1  ;;  %v827_v12 = vld [vmem:[%s1122_s4 + $0x10] sm:$0xff]  }
   0x4   :  { %v52_v5 = vsel %vm50_vm0, %v45_v3, 0  ;;  %744 = vmatpush3.bf16.msra.mxu1 %v822_v4  ;;  %v823_v8 = vld [vmem:[%s1122_s4] sm:$0xff]  }
   0x5   :  { %738 = vmatpush3.bf16.msra.mxu0 %v52_v5  ;;  %745 = vmatprep.subr.bf16.mxu1 %v884_v2 }
   0x6   :  { %755 = vmatprep.subr.bf16.mxu0 %v884_v2 }
   0x8   :  { %740 = vmatmul.mubr.msk.bf16.vlgmr.msra.gmra.mrb[0].mxu0 %vm46_vm2, %v43_v6  ;;  %746 = vmatpush3.bf16.msra.mxu1 %v824_v7 }
   0x9   :  { %756 = vmatpush3.bf16.msra.mxu0 %v823_v8  ;;  %747 = vmatprep.subr.bf16.mxu1 %v884_v2 }
   0xa   :  { %757 = vmatprep.subr.bf16.mxu0 %v884_v2  ;;  %763 = vmatprep.mubr.msk.bf16.mxu0 %vm885_vm1, %v884_v2 }
   0xc   :  { %748 = vmatpush3.bf16.msra.mxu1 %v826_v10 }
   0xd   :  { %758 = vmatpush3.bf16.msra.mxu0 %v825_v9  ;;  %749 = vmatprep.subr.bf16.mxu1 %v884_v2 }
   0xe   :  { %759 = vmatprep.subr.bf16.mxu0 %v884_v2 }
  0x10   :  { %750 = vmatpush3.bf16.msra.mxu1 %v828_v11 }
  0x11   :  { %760 = vmatpush3.bf16.msra.mxu0 %v827_v12  ;;  %767 = vmatprep.subr.bf16.mxu1 %v884_v2 }
  0x12   :  { %19 = vsyncpa [#allocation5], 0  ;;  %761 = vmatprep.subr.bf16.mxu0 %v884_v2  ;;  %v829_v13 = vld [vmem:[%s1122_s4 + $0x18] sm:$0xff]   ;;  %vm132_vm3 = vcmask 523264   ;;  %v830_v15 = vld [vmem:[%s1123_s5] sm:$0xff]   ;;  %vm332_vm4 = vcmask 261120   ;;  %v447_v7 = vstv %s1127_s9 }
  0x13   :  { %v831_v20 = vld [vmem:[%s1123_s5 + $0x8] sm:$0xff]   ;;  %v832_v21 = vld [vmem:[%s1123_s5 + $0x10] sm:$0xff]   ;;  %v833_v22 = vld [vmem:[%s1123_s5 + $0x18] sm:$0xff]   ;;  %v886_v37 = vmov 1040203264   ;;  %vm628_vm6 = vcmask 15360  }
  0x14   :  { %v671_v23 = vld [vmem:[%s1125_s7] ss:$0 sm:$0xff]  ;;  %v683_v39 = vld [vmem:[%s1125_s7 + $0x2] ss:$0 sm:$0xff]  ;;  %v835_v48 = vld [vmem:[%s1124_s6 + $0x8] sm:$0xff]  }
  0x15   :  { %762 = vmatpush3.bf16.msra.mxu0 %v829_v13  ;;  %v330_v41 = vld [vmem:[%s1119_s1] sm:$0xff]  ;;  %v836_v49 = vld [vmem:[%s1124_s6 + $0x10] sm:$0xff]   ;;  %v837_v50 = vld [vmem:[%s1124_s6 + $0x18] sm:$0xff]  }
  0x16   :  { %779 = vmatprep.subr.bf16.mxu0 %v884_v2  ;;  %v834_v47 = vld [vmem:[%s1124_s6] sm:$0xff]   ;;  %v839_v52 = vld [vmem:[%s1126_s8 + $0x8] sm:$0xff]   ;;  %v840_v12 = vld [vmem:[%s1126_s8 + $0x10] sm:$0xff]  }
  0x17   :  { %v838_v51 = vld [vmem:[%s1126_s8] sm:$0xff]   ;;  %v841_v13 = vld [vmem:[%s1126_s8 + $0x18] sm:$0xff]  }
  0x18   :  { %v691_v3 = vld [vmem:[%s1125_s7 + $0x3] ss:$0 sm:$0xff]  ;;  %v692_v5 = vld [vmem:[%s1125_s7 + $0x4] ss:$0 sm:$0xff] }
  0xdb   :  { %v88_v14 = vpop.f32.mrb[0].mxu0 }
  0xdc   :  { %v94_v16 = vpack.c.bf16 %v88_v14, %v88_v14  ;;  %v741_v17 = vpop.f32.mrb[1].mxu0  ;;  %v677_v14 = vld [vmem:[%s1125_s7 + $0x1] ss:$0 sm:$0xff] }
  0xdd   :  { %v91_v18 = vpop.f32.mrb[2].mxu0 }
  0xde   :  { %v742_v19 = vpop.f32.mrb[3].mxu0  ;;  %752 = vmatmul.mubr.msk.bf16.vlgmr.msra.gmra.mrb[0].mxu1 %vm132_vm3, %v94_v16  ;;  %764 = vmatmul.mubr.msk.bf16.vlgmr.msra.gmra.mrb[4].mxu0 %vm132_vm3, %v94_v16 }
  0xdf   :  { %768 = vmatpush3.bf16.msra.mxu1 %v830_v15  ;;  %775 = vmatprep.mubr.msk.bf16.mxu1 %vm885_vm1, %v884_v2 }
  0xe0   :  { %769 = vmatprep.subr.bf16.mxu1 %v884_v2  ;;  %781 = vmatprep.mubr.msk.bf16.mxu0 %vm885_vm1, %v884_v2 }
  0xe3   :  { %770 = vmatpush3.bf16.msra.mxu1 %v831_v20 }
  0xe4   :  { %771 = vmatprep.subr.bf16.mxu1 %v884_v2 }
  0xe7   :  { %772 = vmatpush3.bf16.msra.mxu1 %v832_v21 }
  0xe8   :  { %773 = vmatprep.subr.bf16.mxu1 %v884_v2 }
  0xeb   :  { %774 = vmatpush3.bf16.msra.mxu1 %v833_v22 }
  0xec   :  { %791 = vmatprep.subr.bf16.mxu1 %v884_v2 }
  0xee   :  { %776 = vmatmul.mubr.msk.bf16.vlgmr.msra.gmra.mrb[4].mxu1 %vm132_vm3, %v94_v16  ;;  %v693_v16 = vld [vmem:[%s1125_s7 + $0x5] ss:$0 sm:$0xff]  ;;  %s887_s7 = smov [#allocation3]  }
  0xef   :  { %799 = vmatprep.mubr.msk.bf16.mxu1 %vm885_vm1, %v884_v2  ;;  %792 = vmatpush3.bf16.msra.mxu1 %v834_v47  ;;  %s649_s8 = sshll.u32 %s887_s7, 4  ;;  %s650_s8 = int_to_ptr.vmem [resolvable:$true] %s649_s8 }
  0xf0   :  { %793 = vmatprep.subr.bf16.mxu1 %v884_v2  ;;  %s848_s24 = scalar_lea.vmem %s650_s8, 128  ;;  %p853_p1 = scmp.lt.s32.totalorder %s650_s8, %s650_s8 }
  0xf1   :  { %p849_p0 = scmp.ne.s32.totalorder %s650_s8, %s848_s24  ;;  %p854_p2 = scmp.lt.s32.totalorder %s848_s24, %s848_s24 }
  0xf3   :  { %794 = vmatpush3.bf16.msra.mxu1 %v835_v48  ;;  %p855_p3 = por %p854_p2, %p853_p1 }
  0xf4   :  { %795 = vmatprep.subr.bf16.mxu1 %v884_v2 }
  0xf5   :  { %p856_p4 = pnand %p855_p3, %p849_p0 }
  0xf7   :  { %796 = vmatpush3.bf16.msra.mxu1 %v836_v49 }
  0xf8   :  { %797 = vmatprep.subr.bf16.mxu1 %v884_v2 }
  0xfb   :  { %798 = vmatpush3.bf16.msra.mxu1 %v837_v50 }
 0x1b1   :  { %v170_v24 = vpop.f32.mrb[0].mxu1  ;;  %v1026_v25 = vpop.f32.mrb[4].mxu0 }
 0x1b2   :  { %v1028_v26 = vadd.f32 %v671_v23, %v170_v24  ;;  %v753_v27 = vpop.f32.mrb[1].mxu1  ;;  %v765_v28 = vpop.f32.mrb[5].mxu0  ;;  %v248_v15 = vadd.f32 %v677_v14, %v1026_v25 }
 0x1b3   :  { %v173_v29 = vpop.f32.mrb[2].mxu1  ;;  %v250_v30 = vpop.f32.mrb[6].mxu0 }
 0x1b4   :  { %v334_v31 = vpack.c.bf16 %v1028_v26, %v1028_v26  ;;  %v381_v32 = vmul.f32 %v1028_v26, %v1028_v26  ;;  %v754_v33 = vpop.f32.mrb[3].mxu1  ;;  %v766_v34 = vpop.f32.mrb[7].mxu0  ;;  %v533_v20 = vmul.f32 %v248_v15, %v248_v15 }
 0x1b6   :  { %v339_v35 = vsel %vm50_vm0, %v334_v31, 0  ;;  %v382_v36 = vpack.c.bf16 %v381_v32, %v381_v32  ;;  %v535_v27 = vpack.c.bf16 %v533_v20, %v533_v20 }
 0x1b7   :  { %780 = vmatpush3.bf16.msra.mxu0 %v339_v35 }
 0x1b8   :  { %785 = vmatprep.subr.bf16.mxu0 %v884_v2  ;;  %v384_v38 = vsel %vm50_vm0, %v382_v36, 0 }
 0x1ba   :  { %782 = vmatmul.mubr.msk.bf16.vlgmr.msra.gmra.mrb[8].mxu0 %vm46_vm2, %v886_v37 }
 0x1bb   :  { %786 = vmatpush3.bf16.msra.mxu0 %v384_v38  ;;  %787 = vmatprep.mubr.msk.bf16.mxu0 %vm885_vm1, %v884_v2 }
 0x1bc   :  { %803 = vmatprep.subr.bf16.mxu0 %v838_v51 }
 0x1c1   :  { %v324_v40 = vpop.f32.mrb[4].mxu1 }
 0x1c2   :  { %v325_v42 = vadd.f32 %v683_v39, %v324_v40  ;;  %v777_v43 = vpop.f32.mrb[5].mxu1  ;;  %788 = vmatmul.mubr.msk.bf16.vlgmr.msra.gmra.mrb[12].mxu0 %vm46_vm2, %v886_v37 }
 0x1c3   :  { %v327_v44 = vpop.f32.mrb[6].mxu1  ;;  %804 = vmatpush3.bf16.msra.mxu0 %v838_v51 }
 0x1c4   :  { %v778_v45 = vpop.f32.mrb[7].mxu1  ;;  %v331_v46 = vadd.f32 %v330_v41, %v325_v42  ;;  %805 = vmatprep.subr.bf16.mxu0 %v839_v52 }
 0x1c6   :  { %333 = vst.msk [vmem:[#allocation3] sm:$0xff] %vm332_vm4, %v331_v46 }
 0x1c7   :  { %806 = vmatpush3.bf16.msra.mxu0 %v839_v52 }
 0x1c8   :  { %807 = vmatprep.subr.bf16.mxu0 %v840_v12 }
 0x1cb   :  { %808 = vmatpush3.bf16.msra.mxu0 %v840_v12 }
 0x1cc   :  { %809 = vmatprep.subr.bf16.mxu0 %v841_v13 }
 0x1cf   :  { %810 = vmatpush3.bf16.msra.mxu0 %v841_v13 }
 0x28d   :  { %v375_v53 = vpop.f32.mrb[8].mxu0 }
 0x28e   :  { %v783_v54 = vpop.f32.mrb[9].mxu0  ;;  %v426_v57 = vmul.f32 %v375_v53, %v375_v53  ;;  %v429_v1 = vsub.f32 %v1028_v26, %v375_v53 }
 0x28f   :  { %v378_v55 = vpop.f32.mrb[10].mxu0 }
 0x290   :  { %v784_v56 = vpop.f32.mrb[11].mxu0 }
 0x295   :  { %v420_v58 = vpop.f32.mrb[12].mxu0 }
 0x296   :  { %v427_v59 = vsub.f32 %v420_v58, %v426_v57  ;;  %v789_v60 = vpop.f32.mrb[13].mxu0 }
 0x297   :  { %v423_v61 = vpop.f32.mrb[14].mxu0 }
 0x298   :  { %v428_v62 = vmax.f32 %v427_v59, 0.0  ;;  %v790_v63 = vpop.f32.mrb[15].mxu0 }
 0x29a   :  { %v430_v0 = vadd.f32 1e-05, %v428_v62 }
 0x29c   :  { %842 = vrsqrt.f32 %v430_v0 }
 0x2a6   :  { %v843_v2 = vpop.eup %842 }
 0x2a7   :  { %v432_v4 = vmul.f32 %v843_v2, %v429_v1 }
 0x2a9   :  { %v438_v6 = vmul.f32 %v691_v3, %v432_v4 }
 0x2ab   :  { %v444_v8 = vadd.f32 %v692_v5, %v438_v6 }
 0x2ad   :  { %vm446_vm5 = vcmp.ge.f32.partialorder %v444_v8, 0.0  ;;  %v448_v9 = vmul.f32 %v447_v7, %v444_v8 }
 0x2af   :  { %v449_v10 = vsel %vm446_vm5, %v444_v8, %v448_v9 }
 0x2b0   :  { %v450_v11 = vpack.c.bf16 %v449_v10, %v449_v10 }
 0x2b2   :  { %800 = vmatmul.mubr.msk.bf16.vlgmr.msra.gmra.mrb[8].mxu1 %vm132_vm3, %v450_v11 }
 0x385   :  { %v525_v17 = vpop.f32.mrb[8].mxu1 }
 0x386   :  { %v526_v18 = vadd.f32 %v693_v16, %v525_v17  ;;  %v801_v19 = vpop.f32.mrb[9].mxu1 }
 0x387   :  { %v528_v21 = vpop.f32.mrb[10].mxu1 }
 0x388   :  { %v531_v22 = vmul.f32 %v526_v18, %v248_v15  ;;  %v532_v23 = vmul.f32 %v526_v18, %v526_v18  ;;  %v802_v24 = vpop.f32.mrb[11].mxu1 }
 0x38a   :  { %v534_v26 = vpack.c.bf16 %v532_v23, %v531_v22 }
 0x38c   :  { %811 = vmatprep.mubr.msk.bf16.mxu0 %vm132_vm3, %v534_v26 }
 0x38d   :  { %812 = vmatmul.mubr.msk.bf16.vlgmr.msra.gmra.mrb[16].mxu0 %vm132_vm3, %v535_v27 }
 0x460   :  { %v813_v28 = vpop.f32.mrb[16].mxu0 }
 0x461   :  { %v624_v25 = vmax.f32 %v813_v28, 1e-24  ;;  %v608_v29 = vpop.f32.mrb[17].mxu0 }
 0x462   :  { %v814_v30 = vpop.f32.mrb[18].mxu0 }
 0x463   :  { %v611_v31 = vpop.f32.mrb[19].mxu0  ;;  %844 = vrsqrt.f32 %v624_v25 }
 0x464   :  { %v622_v32 = vmax.f32 %v611_v31, 1e-24 }
 0x466   :  { %846 = vrsqrt.f32 %v622_v32 }
 0x46d   :  { %v845_v33 = vpop.eup %844 }
 0x470   :  { %v847_v34 = vpop.eup %846 }
 0x471   :  { %v626_v35 = vmul.f32 %v847_v34, %v845_v33 }
 0x473   :  { %v627_v36 = vmul.f32 %v626_v35, %v608_v29 }
 0x475   :  { %v629_v37 = vsel %vm628_vm6, %v627_v36, 0.0 }
 0x476   :  { %630 = vadd.xlane.f32.xlu0 %v629_v37 }
 0x477   :  { %859 = shalt.err (!%p856_p4)
}
 0x478   :  { %s860_s27 = scalar_lea.hbm %s1128_s10, 128 }
 0x479   :  { %p861_p5 = scmp.ne.s32.totalorder %s1128_s10, %s860_s27  ;;  %p864_p6 = scmp.lt.u32.totalorder %s860_s27, %s1128_s10 }
 0x47b   :  { %p866_p7 = pnand %p864_p6, %p861_p5 }
 0x47d   :  { %869 = shalt.err (!%p866_p7)
}
 0x47e   :  { %652 = dma.vmem_to_hbm [thread:$0]  %s650_s8, 128, %s1128_s10, [#allocation4]  }
 0x47f   :  { %s870_s17 = scalar_lea.hbm %s1129_s11, 16 }
 0x480   :  { %p871_p8 = scmp.ne.s32.totalorder %s1129_s11, %s870_s17  ;;  %p874_p9 = scmp.lt.u32.totalorder %s870_s17, %s1129_s11 }
 0x482   :  { %p876_p10 = pnand %p874_p9, %p871_p8 }
 0x503   :  { %v631_v38 = vpop.xlane.xlu0 %630 }
 0x504   :  { %v632_v39 = vrot.slane %v631_v38, 4 }
 0x506   :  { %v633_v40 = vadd.f32 %v632_v39, %v631_v38 }
 0x508   :  { %v634_v41 = vrot.slane %v633_v40, 2 }
 0x50a   :  { %v635_v42 = vadd.f32 %v634_v41, %v633_v40 }
 0x50c   :  { %v636_v43 = vrot.slane %v635_v42, 1 }
 0x50e   :  { %v637_v44 = vadd.f32 %v636_v43, %v635_v42 }
 0x510   :  { %815 = vpush %v637_v44 }
 0x541   :  { %s816_s3 = spop %815 }
 0x542   :  { %s639_s14 = smul.f32 0.25, %s816_s3 }
 0x544   :  { %s640_s15 = ssub.f32 4.0, %s639_s14 }
 0x546   :  { %642 = sst [smem:[#allocation6]] %s640_s15 }
 0x547   :  { %879 = shalt.err (!%p876_p10)
}
 0x548   :  { %s888_s20 = smov [#allocation6]  }
 0x549   :  { %660 = dma.smem_to_hbm %s888_s20, 16, %s1129_s11, [#allocation5]  }
 0x54a   :  { %880 = dma.done.wait [#allocation4], 128  }
 0x54b   :  { %881 = vsyncadd [#allocation4], 4294967168 }
 0x54c   :  { %882 = dma.done.wait [#allocation5], 16  }
 0x54d   :  { %883 = vsyncadd [#allocation5], 4294967280 }
 0x54e   :  { %667 = sfence }
 0x54f   :  { %668 = vsyncpa [#allocation4], 1 }
 0x550   :  { %669 = vsyncpa [#allocation5], 1 }

</bundles_post_ra>
